<compile_context>
chip_gen: v7x
topology: tpu7x:2x2x1
jax: 0.10.0
libtpu: 0.0.40
codegen_flags: <defaults>
</compile_context>

<pallas_src>
import jax
import jax.numpy as jnp
from jax.experimental import pallas as pl
from jax.experimental.pallas import tpu as pltpu


LANE = 128
SUBLANE = 8
# Conservative budgets that fit every generation's scoped VMEM (v5e default is
# 16 MiB, v6e/v7x 32 MiB; v7x has only 64 MiB physical).  Raise for large F/H
# on v5e/v6e (128 MiB physical).
_VMEM_TILE_BUDGET = 24 * 1024 * 1024
_VMEM_LIMIT_BYTES = 32 * 1024 * 1024


def _round_up(x: int, m: int) -> int:
    return ((x + m - 1) // m) * m


def _vmem_tile_bytes(tile_b: int, f_pad: int, h_pad: int, o: int) -> int:
    """Rough VMEM footprint for one grid step (double-buffered I/O tiles)."""
    o_lanes = _round_up(o, LANE)          # VMEM tiles are physically lane-padded
    bf = 2                                 # bf16 bytes
    x_tiles = 2 * tile_b * f_pad * bf      # double-buffered input tile
    w1 = 2 * f_pad * h_pad * bf            # resident weights (x2 to be safe)
    w2 = 2 * h_pad * o_lanes * bf
    biases = 2 * SUBLANE * (h_pad + o_lanes) * 4
    out_tiles = 2 * tile_b * o_lanes * 4
    h_scratch = tile_b * h_pad * 4         # intermediate activation (f32)
    return x_tiles + w1 + w2 + biases + out_tiles + h_scratch


def _pick_tile_b(batch: int, f_pad: int, h_pad: int, o: int,
                 budget: int = _VMEM_TILE_BUDGET, max_tile: int = 2048) -> int:
    """Largest batch tile (multiple of 8) that fits the VMEM budget."""
    tile = min(_round_up(batch, SUBLANE), max_tile)
    while tile > SUBLANE and _vmem_tile_bytes(tile, f_pad, h_pad, o) > budget:
        tile = _round_up(max(tile // 2, SUBLANE), SUBLANE)
    # Prefer >= 2 grid steps (software pipelining + v7x megacore) when possible.
    if batch > SUBLANE and pl.cdiv(batch, tile) < 2:
        tile = _round_up(max(pl.cdiv(batch, 2), SUBLANE), SUBLANE)
    return tile


def prepare_dense_params(w1, b1, w2, b2, compute_dtype=jnp.bfloat16):
    """Pad + bf16-cast the dense_module weights ONCE at init (not per call).

    K dim (F) and hidden dim (H) are padded to lane-width multiples so every
    MXU operand / VMEM tile is lane-dense.  The output dim O stays unpadded
    (no writeback amplification; the last block dim equals the full array dim,
    which is always a legal BlockSpec).
    """
    F, H = int(w1.shape[0]), int(w1.shape[1])
    O = int(w2.shape[1])
    F_pad, H_pad = _round_up(F, LANE), _round_up(H, LANE)
    w1p = jnp.zeros((F_pad, H_pad), compute_dtype).at[:F, :H].set(
        w1.astype(compute_dtype))
    b1p = jnp.zeros((1, H_pad), jnp.float32).at[:, :H].set(
        b1.reshape(1, -1).astype(jnp.float32))
    w2p = jnp.zeros((H_pad, O), compute_dtype).at[:H, :].set(
        w2.astype(compute_dtype))
    b2p = b2.reshape(1, -1).astype(jnp.float32)
    return w1p, b1p, w2p, b2p


def _deep_kernel(x_ref, w1_ref, b1_ref, w2_ref, b2_ref, o_ref):
    # Layer 1: bf16 MXU matmul with f32 accumulation; bias + ReLU in f32 (VPU).
    h = jnp.dot(x_ref[...], w1_ref[...], preferred_element_type=jnp.float32)
    h = jnp.maximum(h + b1_ref[...], 0.0)
    # Layer 2: cast activations back to bf16 for the MXU, accumulate in f32.
    out = jnp.dot(h.astype(w2_ref.dtype), w2_ref[...],
                  preferred_element_type=jnp.float32)
    o_ref[...] = (out + b2_ref[...]).astype(o_ref.dtype)


@jax.jit
def deep_layer_forward(embeddings, w1p, b1p, w2p, b2p):
    """Pallas DeepLayer.forward: concat(flatten(embeddings)) -> MLP.

    Args:
      embeddings: list of (batch, ...) arrays (the DeepFM embedded fields).
                  Order must match the PyTorch _get_flatten_input field order.
      w1p, b1p, w2p, b2p: pre-padded params from prepare_dense_params().

    Returns:
      (batch, out_features) float32 array.
    """
    batch = embeddings[0].shape[0]
    F_pad, H_pad = int(w1p.shape[0]), int(w1p.shape[1])
    O = int(w2p.shape[1])
    compute_dtype = w1p.dtype

    # flatten(1) + concat + bf16 cast + zero-pad F -> F_pad in ONE fused XLA
    # concatenate: no separate astype/pad HBM pass, and the kernel reads half
    # the bytes it would in f32.
    pieces = [e.reshape(batch, -1).astype(compute_dtype) for e in embeddings]
    F = sum(int(p.shape[1]) for p in pieces)
    if F_pad > F:
        pieces.append(jnp.zeros((batch, F_pad - F), compute_dtype))
    x = jnp.concatenate(pieces, axis=1)            # (B, F_pad), lane-dense bf16

    tile_b = _pick_tile_b(batch, F_pad, H_pad, O)
    grid = (pl.cdiv(batch, tile_b),)

    bf = jnp.dtype(compute_dtype).itemsize
    cost = pl.CostEstimate(
        flops=2 * batch * (F_pad * H_pad + H_pad * O),
        transcendentals=0,
        bytes_accessed=(batch * F_pad * bf
                        + (F_pad * H_pad + H_pad * O) * bf
                        + (H_pad + O) * 4
                        + batch * O * 4),
    )

    return pl.pallas_call(
        _deep_kernel,
        out_shape=jax.ShapeDtypeStruct((batch, O), jnp.float32),
        grid=grid,
        in_specs=[
            pl.BlockSpec((tile_b, F_pad), lambda i: (i, 0)),   # moves with grid
            pl.BlockSpec((F_pad, H_pad), lambda i: (0, 0)),    # VMEM-resident
            pl.BlockSpec((1, H_pad), lambda i: (0, 0)),
            pl.BlockSpec((H_pad, O), lambda i: (0, 0)),
            pl.BlockSpec((1, O), lambda i: (0, 0)),
        ],
        out_specs=pl.BlockSpec((tile_b, O), lambda i: (i, 0)),
        compiler_params=pltpu.CompilerParams(
            dimension_semantics=("parallel",),
            vmem_limit_bytes=_VMEM_LIMIT_BYTES),
        cost_estimate=cost,
    )(x, w1p, b1p, w2p, b2p)


def init_dense_params(key, in_features, hidden, out_features,
                      dtype=jnp.float32):
    """Deterministic init of the dense_module (2-layer MLP), PyTorch-style."""
    k1, k2, k3, k4 = jax.random.split(key, 4)
    s1 = 1.0 / jnp.sqrt(in_features)
    s2 = 1.0 / jnp.sqrt(hidden)
    w1 = jax.random.uniform(k1, (in_features, hidden), dtype, -s1, s1)
    b1 = jax.random.uniform(k2, (1, hidden), dtype, -s1, s1)
    w2 = jax.random.uniform(k3, (hidden, out_features), dtype, -s2, s2)
    b2 = jax.random.uniform(k4, (1, out_features), dtype, -s2, s2)
    return w1, b1, w2, b2


if __name__ == "__main__":
    key = jax.random.PRNGKey(0)
    k_e1, k_e2, k_e3, k_p = jax.random.split(key, 4)

    batch = 8
    # A list of embedded features (mixed trailing shapes, like DeepFM fields).
    embeddings = [
        jax.random.normal(k_e1, (batch, 16), jnp.float32),     # flattens to 16
        jax.random.normal(k_e2, (batch, 8), jnp.float32),      # flattens to 8
        jax.random.normal(k_e3, (batch, 4, 2), jnp.float32),   # flattens to 8
    ]
    in_features = 16 + 8 + 8   # 32
    hidden = 32
    out_features = 16

    w1, b1, w2, b2 = init_dense_params(k_p, in_features, hidden, out_features)
    params = prepare_dense_params(w1, b1, w2, b2)   # once, at "model init"

    out = deep_layer_forward(embeddings, *params)
    out = jax.block_until_ready(out)
    assert out.shape == (batch, out_features)

    # Reference with the same bf16 operand rounding + f32 accumulation.
    x_bf = jnp.concatenate(
        [e.reshape(batch, -1) for e in embeddings], axis=1).astype(jnp.bfloat16)
    h_ref = jnp.maximum(
        jnp.dot(x_bf, w1.astype(jnp.bfloat16),
                preferred_element_type=jnp.float32) + b1, 0.0)
    ref = jnp.dot(h_ref.astype(jnp.bfloat16), w2.astype(jnp.bfloat16),
                  preferred_element_type=jnp.float32) + b2
    assert jnp.allclose(out, ref, atol=2e-2, rtol=2e-2), (
        float(jnp.max(jnp.abs(out - ref))))

    print("KERNEL_OK")
</pallas_src>

<mosaic_0001>
module attributes {stable_mosaic.version = 11 : i64} {
  func.func @_deep_kernel(%arg0: i32, %arg1: memref<8x128xbf16, #tpu.memory_space<vmem>>, %arg2: memref<128x128xbf16, #tpu.memory_space<vmem>>, %arg3: memref<1x128xf32, #tpu.memory_space<vmem>>, %arg4: memref<128x16xbf16, #tpu.memory_space<vmem>>, %arg5: memref<1x16xf32, #tpu.memory_space<vmem>>, %arg6: memref<8x16xf32, #tpu.memory_space<vmem>>) attributes {dimension_semantics = [#tpu.dimension_semantics<parallel>], iteration_bounds = array<i64: 1>, scalar_prefetch = 0 : i64, scratch_operands = 0 : i64, tpu.core_type = #tpu.core_type<tc>, window_params = [{transform_indices = @transform_0, window_bounds = array<i64: 8, 128>}, {pipeline_mode = #tpu.pipeline_mode<synchronous>, transform_indices = @transform_1, window_bounds = array<i64: 128, 128>}, {pipeline_mode = #tpu.pipeline_mode<synchronous>, transform_indices = @transform_2, window_bounds = array<i64: 1, 128>}, {pipeline_mode = #tpu.pipeline_mode<synchronous>, transform_indices = @transform_3, window_bounds = array<i64: 128, 16>}, {pipeline_mode = #tpu.pipeline_mode<synchronous>, transform_indices = @transform_4, window_bounds = array<i64: 1, 16>}, {transform_indices = @transform_5, window_bounds = array<i64: 8, 16>}]} {
    %c0 = arith.constant 0 : index
    %c0_0 = arith.constant 0 : index
    %0 = vector.load %arg1[%c0, %c0_0] : memref<8x128xbf16, #tpu.memory_space<vmem>>, vector<8x128xbf16>
    %c0_1 = arith.constant 0 : index
    %c0_2 = arith.constant 0 : index
    %1 = vector.load %arg2[%c0_1, %c0_2] : memref<128x128xbf16, #tpu.memory_space<vmem>>, vector<128x128xbf16>
    %cst = arith.constant dense<0.000000e+00> : vector<8x128xf32>
    %2 = tpu.matmul %0, %1, %cst {dimension_numbers = #tpu.dot_dimension_numbers<[1], [0], [0], [1], [0, 0, 1, 1], [], []>} : vector<8x128xbf16>, vector<128x128xbf16>, vector<8x128xf32> -> vector<8x128xf32>
    %c0_3 = arith.constant 0 : index
    %c0_4 = arith.constant 0 : index
    %3 = vector.load %arg3[%c0_3, %c0_4] : memref<1x128xf32, #tpu.memory_space<vmem>>, vector<1x128xf32>
    %4 = vector.broadcast %3 : vector<1x128xf32> to vector<8x128xf32>
    %5 = arith.addf %2, %4 : vector<8x128xf32>
    %cst_5 = arith.constant 0.000000e+00 : f32
    %6 = vector.broadcast %cst_5 : f32 to vector<8x128xf32>
    %7 = arith.maximumf %5, %6 : vector<8x128xf32>
    %8 = arith.truncf %7 : vector<8x128xf32> to vector<8x128xbf16>
    %c0_6 = arith.constant 0 : index
    %c0_7 = arith.constant 0 : index
    %9 = vector.load %arg4[%c0_6, %c0_7] : memref<128x16xbf16, #tpu.memory_space<vmem>>, vector<128x16xbf16>
    %cst_8 = arith.constant dense<0.000000e+00> : vector<8x16xf32>
    %10 = tpu.matmul %8, %9, %cst_8 {dimension_numbers = #tpu.dot_dimension_numbers<[1], [0], [0], [1], [0, 0, 1, 1], [], []>} : vector<8x128xbf16>, vector<128x16xbf16>, vector<8x16xf32> -> vector<8x16xf32>
    %c0_9 = arith.constant 0 : index
    %c0_10 = arith.constant 0 : index
    %11 = vector.load %arg5[%c0_9, %c0_10] : memref<1x16xf32, #tpu.memory_space<vmem>>, vector<1x16xf32>
    %12 = vector.broadcast %11 : vector<1x16xf32> to vector<8x16xf32>
    %13 = arith.addf %10, %12 : vector<8x16xf32>
    %c0_11 = arith.constant 0 : index
    %c0_12 = arith.constant 0 : index
    %14 = vector.load %arg6[%c0_11, %c0_12] : memref<8x16xf32, #tpu.memory_space<vmem>>, vector<8x16xf32>
    tpu.vector_store %arg6[%c0_11, %c0_12], %13 {strides = array<i32>} : memref<8x16xf32, #tpu.memory_space<vmem>>, vector<8x16xf32>,
    return
  }
  func.func @transform_0(%arg0: i32) -> (i32, i32) {
    %c0_i32 = arith.constant 0 : i32
    %c0_i32_0 = arith.constant 0 : i32
    return %arg0, %c0_i32 : i32, i32
  }
  func.func @transform_1(%arg0: i32) -> (i32, i32) {
    %c0_i32 = arith.constant 0 : i32
    %c0_i32_0 = arith.constant 0 : i32
    %c0_i32_1 = arith.constant 0 : i32
    return %c0_i32, %c0_i32_0 : i32, i32
  }
  func.func @transform_2(%arg0: i32) -> (i32, i32) {
    %c0_i32 = arith.constant 0 : i32
    %c0_i32_0 = arith.constant 0 : i32
    %c0_i32_1 = arith.constant 0 : i32
    return %c0_i32, %c0_i32_0 : i32, i32
  }
  func.func @transform_3(%arg0: i32) -> (i32, i32) {
    %c0_i32 = arith.constant 0 : i32
    %c0_i32_0 = arith.constant 0 : i32
    %c0_i32_1 = arith.constant 0 : i32
    return %c0_i32, %c0_i32_0 : i32, i32
  }
  func.func @transform_4(%arg0: i32) -> (i32, i32) {
    %c0_i32 = arith.constant 0 : i32
    %c0_i32_0 = arith.constant 0 : i32
    %c0_i32_1 = arith.constant 0 : i32
    return %c0_i32, %c0_i32_0 : i32, i32
  }
  func.func @transform_5(%arg0: i32) -> (i32, i32) {
    %c0_i32 = arith.constant 0 : i32
    %c0_i32_0 = arith.constant 0 : i32
    return %arg0, %c0_i32 : i32, i32
  }
}

</mosaic_0001>

<bundles_post_ra>
// kernel: deep_layer_forward.1
= control target key start
LH: loop header
LB: loop body
LE: loop exit
PB: predicated region body
PF: predicated region fallthrough
CT: control target
= control target key end

     0   :  { %v382_v1 = vmov 0.0   ;;  %vm383_vm0 = vmmov 0   ;;  %s484_s0 = inlined_call_operand.vmem [shape: bf16[8,128], index: 0, kind: input, shape index: {}]   ;;  %s485_s1 = inlined_call_operand.vmem [shape: bf16[128,128], index: 1, kind: input, shape index: {}]   ;;  %s486_s2 = inlined_call_operand.vmem [shape: f32[1,128], index: 2, kind: input, shape index: {}]   ;;  %s487_s3 = inlined_call_operand.vmem [shape: bf16[128,16], index: 3, kind: input, shape index: {}]   ;;  %s488_s4 = inlined_call_operand.vmem [shape: f32[1,16], index: 4, kind: input, shape index: {}]   ;;  %s489_s5 = inlined_call_operand.hbm [shape: f32[8,16], index: 5, kind: output, shape index: {}]  }
   0x1   :  { %v342_v0 = vld [vmem:[%s485_s1] sm:$0xff]   ;;  %299 = vmatprep.subr.bf16.mxu0 %v382_v1  ;;  %319 = vmatprep.subr.bf16.mxu1 %v382_v1  ;;  %v343_v2 = vld [vmem:[%s485_s1 + $0x8] sm:$0xff]   ;;  %v344_v3 = vld [vmem:[%s485_s1 + $0x10] sm:$0xff]  }
   0x2   :  { %300 = vmatpush3.bf16.msra.mxu0 %v342_v0  ;;  %315 = vmatprep.mubr.msk.bf16.mxu0 %vm383_vm0, %v382_v1  ;;  %v350_v4 = vld [vmem:[%s487_s3] sm:$0xff]   ;;  %v345_v5 = vld [vmem:[%s485_s1 + $0x18] sm:$0xff]   ;;  %v351_v6 = vld [vmem:[%s487_s3 + $0x8] sm:$0xff]  }
   0x3   :  { %301 = vmatprep.subr.bf16.mxu0 %v382_v1  ;;  %335 = vmatprep.mubr.msk.bf16.mxu1 %vm383_vm0, %v382_v1  ;;  %v346_v7 = vld [vmem:[%s485_s1 + $0x20] sm:$0xff]   ;;  %v352_v8 = vld [vmem:[%s487_s3 + $0x10] sm:$0xff]  }
   0x4   :  { %320 = vmatpush3.bf16.msra.mxu1 %v350_v4 }
   0x5   :  { %321 = vmatprep.subr.bf16.mxu1 %v382_v1 }
   0x6   :  { %302 = vmatpush3.bf16.msra.mxu0 %v343_v2 }
   0x7   :  { %303 = vmatprep.subr.bf16.mxu0 %v382_v1 }
   0x8   :  { %322 = vmatpush3.bf16.msra.mxu1 %v351_v6 }
   0x9   :  { %323 = vmatprep.subr.bf16.mxu1 %v382_v1 }
   0xa   :  { %304 = vmatpush3.bf16.msra.mxu0 %v344_v3 }
   0xb   :  { %305 = vmatprep.subr.bf16.mxu0 %v382_v1 }
   0xe   :  { %306 = vmatpush3.bf16.msra.mxu0 %v345_v5 }
   0xf   :  { %307 = vmatprep.subr.bf16.mxu0 %v382_v1 }
  0x10   :  { %10 = vsyncpa [#allocation3], 0  ;;  %v347_v9 = vld [vmem:[%s485_s1 + $0x28] sm:$0xff]   ;;  %324 = vmatpush3.bf16.msra.mxu1 %v352_v8  ;;  %v353_v10 = vld [vmem:[%s487_s3 + $0x18] sm:$0xff]   ;;  %s384_s29 = smov [#allocation2]   ;;  %vm247_vm1 = vcmask 130048  }
  0x11   :  { %325 = vmatprep.subr.bf16.mxu1 %v382_v1  ;;  %v348_v11 = vld [vmem:[%s485_s1 + $0x30] sm:$0xff]   ;;  %v354_v12 = vld [vmem:[%s487_s3 + $0x20] sm:$0xff]   ;;  %v349_v13 = vld [vmem:[%s485_s1 + $0x38] sm:$0xff]   ;;  %s255_s30 = sshll.u32 %s384_s29, 4  ;;  %s256_s30 = int_to_ptr.vmem [resolvable:$true] %s255_s30 }
  0x12   :  { %308 = vmatpush3.bf16.msra.mxu0 %v346_v7  ;;  %v355_v14 = vld [vmem:[%s487_s3 + $0x28] sm:$0xff]   ;;  %v22_v15 = vld [vmem:[%s484_s0] sm:$0xf]  ;;  %v356_v16 = vld [vmem:[%s487_s3 + $0x30] sm:$0xff]   ;;  %p363_p1 = scmp.lt.s32.totalorder %s256_s30, %s256_s30 }
  0x13   :  { %309 = vmatprep.subr.bf16.mxu0 %v382_v1  ;;  %v357_v17 = vld [vmem:[%s487_s3 + $0x38] sm:$0xff]   ;;  %v263_v18 = vld [vmem:[%s486_s2] ss:$0 sm:$0xff]  ;;  %s358_s2 = scalar_lea.vmem %s256_s30, 128 }
  0x14   :  { %326 = vmatpush3.bf16.msra.mxu1 %v353_v10  ;;  %v272_v26 = vld [vmem:[%s488_s4] ss:$0 sm:$0xff]  ;;  %p359_p0 = scmp.ne.s32.totalorder %s256_s30, %s358_s2  ;;  %p364_p2 = scmp.lt.s32.totalorder %s358_s2, %s358_s2 }
  0x15   :  { %327 = vmatprep.subr.bf16.mxu1 %v382_v1 }
  0x16   :  { %310 = vmatpush3.bf16.msra.mxu0 %v347_v9  ;;  %p365_p3 = por %p364_p2, %p363_p1 }
  0x17   :  { %311 = vmatprep.subr.bf16.mxu0 %v382_v1 }
  0x18   :  { %328 = vmatpush3.bf16.msra.mxu1 %v354_v12  ;;  %p366_p4 = pnand %p365_p3, %p359_p0 }
  0x19   :  { %329 = vmatprep.subr.bf16.mxu1 %v382_v1 }
  0x1a   :  { %312 = vmatpush3.bf16.msra.mxu0 %v348_v11 }
  0x1b   :  { %313 = vmatprep.subr.bf16.mxu0 %v382_v1 }
  0x1c   :  { %330 = vmatpush3.bf16.msra.mxu1 %v355_v14 }
  0x1d   :  { %331 = vmatprep.subr.bf16.mxu1 %v382_v1 }
  0x1e   :  { %314 = vmatpush3.bf16.msra.mxu0 %v349_v13 }
  0x20   :  { %332 = vmatpush3.bf16.msra.mxu1 %v356_v16 }
  0x21   :  { %316 = vmatmul.mubr.bf16.vlgmr.msra.gmra.mrb[0].mxu0 %v22_v15  ;;  %333 = vmatprep.subr.bf16.mxu1 %v382_v1 }
  0x24   :  { %334 = vmatpush3.bf16.msra.mxu1 %v357_v17 }
  0xf4   :  { %v128_v19 = vpop.f32.mrb[0].mxu0 }
  0xf5   :  { %v129_v20 = vadd.f32 %v263_v18, %v128_v19  ;;  %v317_v21 = vpop.f32.mrb[1].mxu0 }
  0xf6   :  { %v131_v22 = vpop.f32.mrb[2].mxu0 }
  0xf7   :  { %v134_v23 = vmax.f32 %v129_v20, 0.0  ;;  %v318_v24 = vpop.f32.mrb[3].mxu0 }
  0xf9   :  { %v135_v25 = vpack.c.bf16 %v134_v23, %v134_v23 }
  0xfb   :  { %336 = vmatmul.mubr.bf16.vlgmr.msra.gmra.mrb[0].mxu1 %v135_v25 }
 0x1ce   :  { %v241_v27 = vpop.f32.mrb[0].mxu1 }
 0x1cf   :  { %v242_v28 = vadd.f32 %v272_v26, %v241_v27  ;;  %v337_v29 = vpop.f32.mrb[1].mxu1 }
 0x1d0   :  { %v244_v30 = vpop.f32.mrb[2].mxu1 }
 0x1d1   :  { %v338_v31 = vpop.f32.mrb[3].mxu1  ;;  %248 = vst.msk [vmem:[#allocation2] sm:$0xff] %vm247_vm1, %v242_v28 }
 0x1d2   :  { %369 = shalt.err (!%p366_p4)
}
 0x1d3   :  { %s370_s4 = scalar_lea.hbm %s489_s5, 128 }
 0x1d4   :  { %p371_p5 = scmp.ne.s32.totalorder %s489_s5, %s370_s4  ;;  %p374_p6 = scmp.lt.u32.totalorder %s370_s4, %s489_s5 }
 0x1d6   :  { %p376_p7 = pnand %p374_p6, %p371_p5 }
 0x1d8   :  { %379 = shalt.err (!%p376_p7)
}
 0x1d9   :  { %258 = dma.vmem_to_hbm [thread:$0]  %s256_s30, 128, %s489_s5, [#allocation3]  }
 0x1da   :  { %380 = dma.done.wait [#allocation3], 128  }
 0x1db   :  { %381 = vsyncadd [#allocation3], 4294967168 }
 0x1dc   :  { %262 = vsyncpa [#allocation3], 1 }

</bundles_post_ra>
